<compile_context>
chip_gen: v7x
topology: tpu7x:2x2x1
jax: 0.10.0
libtpu: 0.0.40
codegen_flags: <defaults>
</compile_context>

<pallas_src>
import functools

import jax
import jax.numpy as jnp
from jax.experimental import pallas as pl
from jax.experimental.pallas import tpu as pltpu


IN_FEATURES = 126
HIDDEN = 20
N_CLASSES = 2
LANE = 128  # padded hidden width (lane dimension of w1 / b1 / w2_diff)


def _round_up(x, m):
    return ((x + m - 1) // m) * m


def _softplus(t):
    # Numerically stable softplus using only exp/log/max/abs (VPU + EUP ops).
    return jnp.maximum(t, 0.0) + jnp.log(1.0 + jnp.exp(-jnp.abs(t)))


def mlp_kernel(x_ref, w1_ref, b1_ref, w2d_ref, bd_ref, o_ref):
    # ---- Layer 1: (TB,126) @ (126,128) on the MXU; bf16 inputs, f32 accumulate.
    x_bf = x_ref[...].astype(jnp.bfloat16)  # no-op if x already bf16
    pre = jnp.dot(x_bf, w1_ref[...], preferred_element_type=jnp.float32)
    h = jnp.tanh(pre + b1_ref[...])  # padded hidden cols: tanh(0 + 0) = 0

    # ---- Layer 2 collapsed to a difference matvec: d = logit0 - logit1.
    d = jnp.dot(h.astype(jnp.bfloat16), w2d_ref[...],
                preferred_element_type=jnp.float32) + bd_ref[0]  # (TB, 1)

    # ---- Closed-form 2-class log-softmax: out = [-softplus(-d), -softplus(d)].
    col = jax.lax.broadcasted_iota(jnp.int32, o_ref.shape, 1)  # (TB, 2)
    t = jnp.where(col == 0, -d, d)
    o_ref[...] = (-_softplus(t)).astype(o_ref.dtype)


def prepare_params(w1, b1, w2, b2):
    """Pad / fold the parameters once, outside the kernel.

    Inputs stored as (in, out): w1 (126,20), b1 (20,), w2 (20,2), b2 (2,).
    Returns:
      w1_bf  : (126, 128) bf16, cols 0..19 = w1, rest 0
      b1_pad : (1, 128)   f32,  cols 0..19 = b1, rest 0 (keeps padded h exactly 0)
      w2_diff: (128, 1)   bf16, rows 0..19 = w2[:,0]-w2[:,1], rest 0
      b_diff : (1,)       f32,  b2[0]-b2[1]  (SMEM scalar)
    """
    w1_pad = jnp.zeros((IN_FEATURES, LANE), jnp.float32)
    w1_pad = w1_pad.at[:, :HIDDEN].set(w1.astype(jnp.float32))
    w1_bf = w1_pad.astype(jnp.bfloat16)

    b1_pad = jnp.zeros((1, LANE), jnp.float32)
    b1_pad = b1_pad.at[0, :HIDDEN].set(b1.reshape(-1).astype(jnp.float32))

    w2_diff = jnp.zeros((LANE, 1), jnp.float32)
    w2_diff = w2_diff.at[:HIDDEN, 0].set(
        (w2[:, 0] - w2[:, 1]).astype(jnp.float32))
    w2_diff = w2_diff.astype(jnp.bfloat16)

    b_diff = (b2[0] - b2[1]).reshape(1).astype(jnp.float32)
    return w1_bf, b1_pad, w2_diff, b_diff


@functools.partial(jax.jit, static_argnames=("block_rows",))
def mlp_forward(x, w1_bf, b1_pad, w2_diff, b_diff, *, block_rows=4096):
    B = x.shape[0]

    # Tile-size policy:
    #  * multiple of 8 (sublane rule), hard cap 8192 rows,
    #  * n_blocks >= 2 whenever the batch can be split (v7x dual-TC / megacore),
    #  * per-step x DMA of a few MiB amortizes the ~0.35 us grid-step overhead.
    br = max(8, min(_round_up(block_rows, 8), 8192))
    if B >= 16:
        br = min(br, _round_up(pl.cdiv(B, 2), 8))
    tb = min(br, _round_up(B, 8))
    n_blocks = pl.cdiv(B, tb)

    return pl.pallas_call(
        mlp_kernel,
        out_shape=jax.ShapeDtypeStruct((B, N_CLASSES), jnp.float32),
        grid=(n_blocks,),
        in_specs=[
            # x: streamed per tile, unpadded (126 == full last dim).
            pl.BlockSpec((tb, IN_FEATURES), lambda i: (i, 0)),
            # Weights / biases: constant index maps -> VMEM-resident across grid.
            pl.BlockSpec((IN_FEATURES, LANE), lambda i: (0, 0)),
            pl.BlockSpec((1, LANE), lambda i: (0, 0)),
            pl.BlockSpec((LANE, 1), lambda i: (0, 0)),
            # b_diff: single scalar, lives in SMEM.
            pl.BlockSpec(memory_space=pltpu.MemorySpace.SMEM),
        ],
        out_specs=pl.BlockSpec((tb, N_CLASSES), lambda i: (i, 0)),
        compiler_params=pltpu.CompilerParams(
            dimension_semantics=("parallel",),   # megacore / dual-TC batch split
            vmem_limit_bytes=32 * 1024 * 1024,   # large tiles also fit v5e
        ),
    )(x, w1_bf, b1_pad, w2_diff, b_diff)


def init_params(key):
    """torch.nn.Linear-style init U(-1/sqrt(fan_in), 1/sqrt(fan_in)), stored (in, out)."""
    k1, k2, k3, k4 = jax.random.split(key, 4)
    bound1 = 1.0 / jnp.sqrt(IN_FEATURES)
    bound2 = 1.0 / jnp.sqrt(HIDDEN)
    w1 = jax.random.uniform(k1, (IN_FEATURES, HIDDEN), jnp.float32, -bound1, bound1)
    b1 = jax.random.uniform(k2, (HIDDEN,), jnp.float32, -bound1, bound1)
    w2 = jax.random.uniform(k3, (HIDDEN, N_CLASSES), jnp.float32, -bound2, bound2)
    b2 = jax.random.uniform(k4, (N_CLASSES,), jnp.float32, -bound2, bound2)
    return w1, b1, w2, b2


def reference_forward(x, w1, b1, w2, b2):
    """Exact f32 equivalent of the torch module."""
    h = jnp.tanh(x @ w1 + b1)
    logits = h @ w2 + b2
    return jax.nn.log_softmax(logits, axis=-1)


def reference_forward_bf16(x, w1, b1, w2, b2):
    """Mirrors the kernel's numerics: bf16 MXU inputs, f32 accumulation,
    f32 element-wise math, collapsed 2-class log-softmax."""
    pre = jnp.dot(x.astype(jnp.bfloat16), w1.astype(jnp.bfloat16),
                  preferred_element_type=jnp.float32) + b1.astype(jnp.float32)
    h = jnp.tanh(pre)
    w2d = (w2[:, 0] - w2[:, 1]).astype(jnp.bfloat16)
    d = jnp.dot(h.astype(jnp.bfloat16), w2d,
                preferred_element_type=jnp.float32) + (b2[0] - b2[1])
    return jnp.stack([-_softplus(-d), -_softplus(d)], axis=-1)


if __name__ == "__main__":
    key = jax.random.PRNGKey(0)
    kx, kp, kx2 = jax.random.split(key, 3)

    w1, b1, w2, b2 = init_params(kp)
    params = prepare_params(w1, b1, w2, b2)

    # Small, single-tile case (matches the module's tiny example shape).
    x_small = jax.random.normal(kx, (8, IN_FEATURES), dtype=jnp.float32)
    out_small = jax.block_until_ready(mlp_forward(x_small, *params))
    assert out_small.shape == (8, N_CLASSES), out_small.shape
    ref_small_f32 = reference_forward(x_small, w1, b1, w2, b2)
    ref_small_bf16 = reference_forward_bf16(x_small, w1, b1, w2, b2)
    assert jnp.allclose(out_small, ref_small_bf16, atol=1e-4, rtol=1e-4), \
        "small-batch mismatch vs bf16-matched reference"
    assert jnp.allclose(out_small, ref_small_f32, atol=7.5e-2, rtol=7.5e-2), \
        "small-batch mismatch vs f32 reference"

    # Multi-tile cases with an uneven tail: exercise the grid, partial blocks,
    # VMEM-resident weights and the adaptive tile-size policy.
    x_big = jax.random.normal(kx2, (200, IN_FEATURES), dtype=jnp.float32)
    out_big = jax.block_until_ready(mlp_forward(x_big, *params))                 # tb=104, 2 blocks
    out_big_small = jax.block_until_ready(
        mlp_forward(x_big, *params, block_rows=64))                              # tb=64, 4 blocks
    ref_big_f32 = reference_forward(x_big, w1, b1, w2, b2)
    ref_big_bf16 = reference_forward_bf16(x_big, w1, b1, w2, b2)
    for out in (out_big, out_big_small):
        assert out.shape == (200, N_CLASSES), out.shape
        assert jnp.allclose(out, ref_big_bf16, atol=1e-4, rtol=1e-4), \
            "multi-tile mismatch vs bf16-matched reference"
        assert jnp.allclose(out, ref_big_f32, atol=7.5e-2, rtol=7.5e-2), \
            "multi-tile mismatch vs f32 reference"

    print("KERNEL_OK")
</pallas_src>

<mosaic_0001>
module attributes {stable_mosaic.version = 11 : i64} {
  func.func @mlp_kernel(%arg0: i32, %arg1: memref<8x126xf32, #tpu.memory_space<vmem>>, %arg2: memref<126x128xbf16, #tpu.memory_space<vmem>>, %arg3: memref<1x128xf32, #tpu.memory_space<vmem>>, %arg4: memref<128x1xbf16, #tpu.memory_space<vmem>>, %arg5: memref<1xf32, #tpu.memory_space<smem>>, %arg6: memref<8x2xf32, #tpu.memory_space<vmem>>) attributes {dimension_semantics = [#tpu.dimension_semantics<parallel>], iteration_bounds = array<i64: 1>, scalar_prefetch = 0 : i64, scratch_operands = 0 : i64, tpu.core_type = #tpu.core_type<tc>, window_params = [{transform_indices = @transform_0, window_bounds = array<i64: 8, 126>}, {pipeline_mode = #tpu.pipeline_mode<synchronous>, transform_indices = @transform_1, window_bounds = array<i64: 126, 128>}, {pipeline_mode = #tpu.pipeline_mode<synchronous>, transform_indices = @transform_2, window_bounds = array<i64: 1, 128>}, {pipeline_mode = #tpu.pipeline_mode<synchronous>, transform_indices = @transform_3, window_bounds = array<i64: 128, 1>}, {transform_indices = @transform_4, window_bounds = array<i64: 1>}, {transform_indices = @transform_5, window_bounds = array<i64: 8, 2>}]} {
    %c0 = arith.constant 0 : index
    %c0_0 = arith.constant 0 : index
    %0 = vector.load %arg1[%c0, %c0_0] : memref<8x126xf32, #tpu.memory_space<vmem>>, vector<8x126xf32>
    %1 = arith.truncf %0 : vector<8x126xf32> to vector<8x126xbf16>
    %c0_1 = arith.constant 0 : index
    %c0_2 = arith.constant 0 : index
    %2 = vector.load %arg2[%c0_1, %c0_2] : memref<126x128xbf16, #tpu.memory_space<vmem>>, vector<126x128xbf16>
    %cst = arith.constant dense<0.000000e+00> : vector<8x128xf32>
    %3 = tpu.matmul %1, %2, %cst {dimension_numbers = #tpu.dot_dimension_numbers<[1], [0], [0], [1], [0, 0, 1, 1], [], []>} : vector<8x126xbf16>, vector<126x128xbf16>, vector<8x128xf32> -> vector<8x128xf32>
    %c0_3 = arith.constant 0 : index
    %c0_4 = arith.constant 0 : index
    %4 = vector.load %arg3[%c0_3, %c0_4] : memref<1x128xf32, #tpu.memory_space<vmem>>, vector<1x128xf32>
    %5 = vector.broadcast %4 : vector<1x128xf32> to vector<8x128xf32>
    %6 = arith.addf %3, %5 : vector<8x128xf32>
    %7 = math.tanh %6 : vector<8x128xf32>
    %8 = arith.truncf %7 : vector<8x128xf32> to vector<8x128xbf16>
    %c0_5 = arith.constant 0 : index
    %c0_6 = arith.constant 0 : index
    %9 = vector.load %arg4[%c0_5, %c0_6] : memref<128x1xbf16, #tpu.memory_space<vmem>>, vector<128x1xbf16>
    %cst_7 = arith.constant dense<0.000000e+00> : vector<8x1xf32>
    %10 = tpu.matmul %8, %9, %cst_7 {dimension_numbers = #tpu.dot_dimension_numbers<[1], [0], [0], [1], [0, 0, 1, 1], [], []>} : vector<8x128xbf16>, vector<128x1xbf16>, vector<8x1xf32> -> vector<8x1xf32>
    %c0_8 = arith.constant 0 : index
    %11 = memref.load %arg5[%c0_8] : memref<1xf32, #tpu.memory_space<smem>>
    %12 = vector.broadcast %11 : f32 to vector<8x1xf32>
    %13 = arith.addf %10, %12 : vector<8x1xf32>
    %14 = tpu.iota {dimensions = array<i32: 1>} : vector<8x2xi32>
    %c0_i32 = arith.constant 0 : i32
    %15 = vector.broadcast %c0_i32 : i32 to vector<8x2xi32>
    %16 = arith.cmpi eq, %14, %15 : vector<8x2xi32>
    %cst_9 = arith.constant 0.000000e+00 : f32
    %17 = vector.broadcast %cst_9 : f32 to vector<8x1xf32>
    %18 = arith.subf %17, %13 : vector<8x1xf32>
    %19 = vector.shape_cast %18 : vector<8x1xf32> to vector<8x1xf32>
    %20 = vector.broadcast %19 : vector<8x1xf32> to vector<8x2xf32>
    %21 = vector.shape_cast %13 : vector<8x1xf32> to vector<8x1xf32>
    %22 = vector.broadcast %21 : vector<8x1xf32> to vector<8x2xf32>
    %23 = arith.select %16, %20, %22 : vector<8x2xi1>, vector<8x2xf32>
    %cst_10 = arith.constant 0.000000e+00 : f32
    %24 = vector.broadcast %cst_10 : f32 to vector<8x2xf32>
    %25 = arith.maximumf %23, %24 : vector<8x2xf32>
    %26 = math.absf %23 : vector<8x2xf32>
    %cst_11 = arith.constant 0.000000e+00 : f32
    %27 = vector.broadcast %cst_11 : f32 to vector<8x2xf32>
    %28 = arith.subf %27, %26 : vector<8x2xf32>
    %29 = math.exp %28 : vector<8x2xf32>
    %cst_12 = arith.constant 1.000000e+00 : f32
    %30 = vector.broadcast %cst_12 : f32 to vector<8x2xf32>
    %31 = arith.addf %30, %29 : vector<8x2xf32>
    %32 = math.log %31 : vector<8x2xf32>
    %33 = arith.addf %25, %32 : vector<8x2xf32>
    %cst_13 = arith.constant 0.000000e+00 : f32
    %34 = vector.broadcast %cst_13 : f32 to vector<8x2xf32>
    %35 = arith.subf %34, %33 : vector<8x2xf32>
    %c0_14 = arith.constant 0 : index
    %c0_15 = arith.constant 0 : index
    %36 = vector.load %arg6[%c0_14, %c0_15] : memref<8x2xf32, #tpu.memory_space<vmem>>, vector<8x2xf32>
    tpu.vector_store %arg6[%c0_14, %c0_15], %35 {strides = array<i32>} : memref<8x2xf32, #tpu.memory_space<vmem>>, vector<8x2xf32>,
    return
  }
  func.func @transform_0(%arg0: i32) -> (i32, i32) {
    %c0_i32 = arith.constant 0 : i32
    %c0_i32_0 = arith.constant 0 : i32
    return %arg0, %c0_i32 : i32, i32
  }
  func.func @transform_1(%arg0: i32) -> (i32, i32) {
    %c0_i32 = arith.constant 0 : i32
    %c0_i32_0 = arith.constant 0 : i32
    %c0_i32_1 = arith.constant 0 : i32
    return %c0_i32, %c0_i32_0 : i32, i32
  }
  func.func @transform_2(%arg0: i32) -> (i32, i32) {
    %c0_i32 = arith.constant 0 : i32
    %c0_i32_0 = arith.constant 0 : i32
    %c0_i32_1 = arith.constant 0 : i32
    return %c0_i32, %c0_i32_0 : i32, i32
  }
  func.func @transform_3(%arg0: i32) -> (i32, i32) {
    %c0_i32 = arith.constant 0 : i32
    %c0_i32_0 = arith.constant 0 : i32
    %c0_i32_1 = arith.constant 0 : i32
    return %c0_i32, %c0_i32_0 : i32, i32
  }
  func.func @transform_4(%arg0: i32) -> i32 {
    %c0_i32 = arith.constant 0 : i32
    %c0_i32_0 = arith.constant 0 : i32
    return %c0_i32 : i32
  }
  func.func @transform_5(%arg0: i32) -> (i32, i32) {
    %c0_i32 = arith.constant 0 : i32
    %c0_i32_0 = arith.constant 0 : i32
    return %arg0, %c0_i32 : i32, i32
  }
}

</mosaic_0001>

<bundles_post_ra>
// kernel: mlp_forward.1
= control target key start
LH: loop header
LB: loop body
LE: loop exit
PB: predicated region body
PF: predicated region fallthrough
CT: control target
= control target key end

     0   :  { %v383_v0 = vmov 0.0   ;;  %vm384_vm0 = vmmov 0   ;;  %vm98_vm1 = vcmask 1046528   ;;  %vm94_vm2 = vcmask 1031168   ;;  %s476_s1 = inlined_call_operand.vmem [shape: bf16[126,128], index: 1, kind: input, shape index: {}]   ;;  %s477_s3 = inlined_call_operand.vmem [shape: bf16[128,1], index: 3, kind: input, shape index: {}]   ;;  %s478_s0 = inlined_call_operand.vmem [shape: f32[8,126], index: 0, kind: input, shape index: {}]   ;;  %s479_s2 = inlined_call_operand.vmem [shape: f32[1,128], index: 2, kind: input, shape index: {}]   ;;  %s480_s4 = inlined_call_operand.<no memory space> [shape: f32[1], index: 4, kind: input, shape index: {}]   ;;  %s481_s5 = inlined_call_operand.vmem [shape: f32[8,2], index: 5, kind: output, shape index: {}]  }
   0x1   :  { %317 = vmatprep.subr.bf16.mxu0 %v383_v0  ;;  %v361_v1 = vld [vmem:[%s476_s1] sm:$0xff]   ;;  %333 = vmatprep.mubr.msk.bf16.mxu0 %vm384_vm0, %v383_v0  ;;  %v362_v2 = vld [vmem:[%s476_s1 + $0x8] sm:$0xff]   ;;  %v363_v3 = vld [vmem:[%s476_s1 + $0x10] sm:$0xff]   ;;  %v385_v28 = vmov 0   ;;  %v161_v29 = vstv %s480_s4  ;;  %v250_v36 = vlaneseq  ;;  %vm275_vm4 = vcmask 15360  }
   0x2   :  { %337 = vmatprep.subr.bf16.mxu1 %v383_v0  ;;  %353 = vmatprep.mubr.msk.bf16.mxu1 %vm384_vm0, %v383_v0  ;;  %v369_v4 = vld [vmem:[%s477_s3] sm:$0xff]   ;;  %v364_v5 = vld [vmem:[%s476_s1 + $0x18] sm:$0xff]   ;;  %v370_v6 = vld [vmem:[%s477_s3 + $0x8] sm:$0xff]  }
   0x3   :  { %318 = vmatpush3.bf16.msra.mxu0 %v361_v1  ;;  %338 = vmatpush3.bf16.msra.mxu1 %v369_v4  ;;  %v365_v7 = vld [vmem:[%s476_s1 + $0x20] sm:$0xff]   ;;  %v371_v8 = vld [vmem:[%s477_s3 + $0x10] sm:$0xff]   ;;  %v366_v9 = vld [vmem:[%s476_s1 + $0x28] sm:$0xff]   ;;  %v251_v37 = vand.u32 127, %v250_v36 }
   0x4   :  { %319 = vmatprep.subr.bf16.mxu0 %v383_v0  ;;  %339 = vmatprep.subr.bf16.mxu1 %v383_v0  ;;  %v372_v10 = vld [vmem:[%s477_s3 + $0x18] sm:$0xff]   ;;  %v367_v11 = vld [vmem:[%s476_s1 + $0x30] sm:$0xff]   ;;  %v22_v13 = vld [vmem:[%s478_s0] sm:$0xff] }
   0x5   :  { %v368_v12 = vld [vmem:[%s476_s1 + $0x38] sm:$0x7f]   ;;  %v23_v15 = vpack.c.bf16 %v22_v13, %v22_v13  ;;  %v373_v16 = vld [vmem:[%s477_s3 + $0x20] sm:$0xff]   ;;  %v374_v17 = vld [vmem:[%s477_s3 + $0x28] sm:$0xff]   ;;  %360 = vset.pattern.permute.xlu0 %v385_v28  ;;  %vm252_vm3 = vcmp.eq.s32.totalorder %v251_v37, 0 }
   0x6   :  { %v100_v14 = vsel %vm98_vm1, %v368_v12, 0  ;;  %v375_v18 = vld [vmem:[%s477_s3 + $0x30] sm:$0xff]   ;;  %v376_v19 = vld [vmem:[%s477_s3 + $0x38] sm:$0xff]   ;;  %v281_v20 = vld [vmem:[%s479_s2] ss:$0 sm:$0xff] }
   0x7   :  { %320 = vmatpush3.bf16.msra.mxu0 %v362_v2  ;;  %340 = vmatpush3.bf16.msra.mxu1 %v370_v6 }
   0x8   :  { %321 = vmatprep.subr.bf16.mxu0 %v383_v0  ;;  %341 = vmatprep.subr.bf16.mxu1 %v383_v0 }
   0xb   :  { %322 = vmatpush3.bf16.msra.mxu0 %v363_v3  ;;  %342 = vmatpush3.bf16.msra.mxu1 %v371_v8 }
   0xc   :  { %323 = vmatprep.subr.bf16.mxu0 %v383_v0  ;;  %343 = vmatprep.subr.bf16.mxu1 %v383_v0 }
   0xf   :  { %324 = vmatpush3.bf16.msra.mxu0 %v364_v5  ;;  %344 = vmatpush3.bf16.msra.mxu1 %v372_v10 }
  0x10   :  { %325 = vmatprep.subr.bf16.mxu0 %v383_v0  ;;  %345 = vmatprep.subr.bf16.mxu1 %v383_v0 }
  0x13   :  { %326 = vmatpush3.bf16.msra.mxu0 %v365_v7  ;;  %346 = vmatpush3.bf16.msra.mxu1 %v373_v16 }
  0x14   :  { %327 = vmatprep.subr.bf16.mxu0 %v383_v0  ;;  %347 = vmatprep.subr.bf16.mxu1 %v383_v0 }
  0x17   :  { %328 = vmatpush3.bf16.msra.mxu0 %v366_v9  ;;  %348 = vmatpush3.bf16.msra.mxu1 %v374_v17 }
  0x18   :  { %329 = vmatprep.subr.bf16.mxu0 %v383_v0  ;;  %349 = vmatprep.subr.bf16.mxu1 %v383_v0 }
  0x1b   :  { %330 = vmatpush3.bf16.msra.mxu0 %v367_v11  ;;  %350 = vmatpush3.bf16.msra.mxu1 %v375_v18 }
  0x1c   :  { %331 = vmatprep.subr.bf16.mxu0 %v383_v0  ;;  %351 = vmatprep.subr.bf16.mxu1 %v383_v0 }
  0x1f   :  { %332 = vmatpush3.bf16.msra.mxu0 %v100_v14  ;;  %352 = vmatpush3.bf16.msra.mxu1 %v376_v19 }
  0x22   :  { %334 = vmatmul.mubr.msk.bf16.vlgmr.msra.gmra.mrb[0].mxu0 %vm94_vm2, %v23_v15 }
  0xf5   :  { %v136_v21 = vpop.f32.mrb[0].mxu0 }
  0xf6   :  { %v137_v22 = vadd.f32 %v281_v20, %v136_v21  ;;  %v335_v23 = vpop.f32.mrb[1].mxu0 }
  0xf7   :  { %v139_v24 = vpop.f32.mrb[2].mxu0 }
  0xf8   :  { %377 = vtanh.f32 %v137_v22  ;;  %v336_v25 = vpop.f32.mrb[3].mxu0 }
 0x102   :  { %v378_v26 = vpop.eup %377 }
 0x103   :  { %v143_v27 = vpack.c.bf16 %v378_v26, %v378_v26 }
 0x105   :  { %354 = vmatmul.mubr.bf16.vlgmr.msra.gmra.mrb[0].mxu1 %v143_v27 }
 0x1d8   :  { %v244_v30 = vpop.f32.mrb[0].mxu1 }
 0x1d9   :  { %v245_v31 = vadd.f32 %v244_v30, %v161_v29  ;;  %v355_v32 = vpop.f32.mrb[1].mxu1 }
 0x1da   :  { %v247_v33 = vpop.f32.mrb[2].mxu1 }
 0x1db   :  { %v356_v34 = vpop.f32.mrb[3].mxu1  ;;  %v253_v35 = vsub.f32 0.0, %v245_v31 }
 0x1dd   :  { %256 = vperm.xlu0 %360, %v253_v35  }
 0x1e1   :  { %261 = vperm.xlu0 %360, %v245_v31  }
 0x25c   :  { %v257_v38 = vpop.permute.xlu0 %256 }
 0x260   :  { %v262_v39 = vpop.permute.xlu0 %261 }
 0x261   :  { %v264_v40 = vsel %vm252_vm3, %v257_v38, %v262_v39 }
 0x262   :  { %v266_v41 = vand.u32 2147483647, %v264_v40  ;;  %v265_v47 = vmax.f32 %v264_v40, 0.0 }
 0x264   :  { %v267_v42 = vsub.f32 0.0, %v266_v41 }
 0x266   :  { %v268_v43 = vmul.f32 1.442695, %v267_v42 }
 0x268   :  { %379 = vpow2.f32 %v268_v43 }
 0x272   :  { %v380_v44 = vpop.eup %379 }
 0x273   :  { %v270_v45 = vadd.f32 1.0, %v380_v44 }
 0x275   :  { %381 = vlog2.f32 %v270_v45 }
 0x27f   :  { %v382_v46 = vpop.eup %381 }
 0x280   :  { %v272_v48 = vmul.f32 0.6931472, %v382_v46 }
 0x282   :  { %v273_v49 = vadd.f32 %v272_v48, %v265_v47 }
 0x284   :  { %v274_v50 = vsub.f32 0.0, %v273_v49 }
 0x286   :  { %276 = vst.msk [vmem:[%s481_s5] sm:$0xff] %vm275_vm4, %v274_v50 }

</bundles_post_ra>
